<compile_context>
chip_gen: v6e
topology: v6e:2x2x1
jax: 0.10.0
libtpu: 0.0.40
codegen_flags: <defaults>
</compile_context>

<pallas_src>
import functools

import jax
import jax.numpy as jnp
from jax.experimental import pallas as pl
from jax.experimental.pallas import tpu as pltpu

_LANE = 128


def _round_up(x, m):
    return (x + m - 1) // m * m


def _apply_activation(x, activation, negative_slope):
    # Post-dot activation math stays in f32 (v5e VPU/EUP have no bf16).
    if activation == "LeakyReLU":
        return jnp.where(x >= 0, x, negative_slope * x)
    if activation == "ReLU":
        return jnp.maximum(x, 0.0)
    if activation == "Tanh":
        return jnp.tanh(x)
    if activation == "Sigmoid":
        return jax.nn.sigmoid(x)
    if activation == "ELU":
        # PyTorch default alpha=1.0 (GeneratorXi never passes a different alpha).
        return jnp.where(x >= 0, x, jnp.exp(x) - 1.0)
    raise NotImplementedError(f"activation {activation!r} not supported in kernel")


def _generator_xi_kernel(*refs, num_linear, activation, negative_slope):
    """refs = (z_ref, w1, b1, w2, b2, ..., wL, bL, out_ref).

    The MLP is computed in the transposed orientation x = (features, rows): rows
    (the batch axis) live on the lane axis, so loads of z are the only row-major
    DMA, all matmuls are `W @ x` with native (out,in) weights, and the final
    (hidden -> 1) layer + |.| write a lane-dense (1, tile_rows) block.
    """
    z_ref, *wb, o_ref = refs

    # bf16 MXU operands, f32 accumulation.
    z = z_ref[...].astype(jnp.bfloat16)                       # (tm, input_dim)

    # Layer 1: contract z's feature axis (last) against W1's `in` axis (last)
    # -> result (h1, tm) is already transposed (rows land on lanes).
    w0 = wb[0][...]                                           # (h1, input_dim) bf16
    b0 = wb[1][...]                                           # (h1, 1) f32
    x = jax.lax.dot_general(
        w0, z, dimension_numbers=(((1,), (1,)), ((), ())),
        preferred_element_type=jnp.float32) + b0              # (h1, tm) f32

    if num_linear == 1:                                       # degenerate: single Linear
        o_ref[...] = jnp.abs(x).astype(o_ref.dtype)
        return

    x = _apply_activation(x, activation, negative_slope)

    # Hidden layers on the MXU.
    for lyr in range(1, num_linear - 1):
        w = wb[2 * lyr][...]                                  # (h_l, h_{l-1}) bf16
        b = wb[2 * lyr + 1][...]                              # (h_l, 1) f32
        x = jnp.dot(w, x.astype(jnp.bfloat16),
                    preferred_element_type=jnp.float32) + b   # (h_l, tm) f32
        x = _apply_activation(x, activation, negative_slope)

    # Final (h_last -> 1) layer on VPU/XLU: multiply + sublane reduce instead of an
    # MXU matmul with one output row; result is lane-dense (1, tm).
    w_last = wb[2 * (num_linear - 1)][...]                    # (h_last, 1) f32
    b_last = wb[2 * (num_linear - 1) + 1][...]                # (1, 1) f32
    y = jnp.sum(x * w_last, axis=0, keepdims=True) + b_last   # (1, tm) f32
    o_ref[...] = jnp.abs(y).astype(o_ref.dtype)


def _pick_tile(n, tile_rows):
    """Row-tile size. Rows sit on the output lane axis, so tiles are multiples of 128
    (or one full-array block for small n). For n >= 256 we force >= 2 grid steps so
    the 'parallel' axis can shard across both TensorCores on v7x."""
    if n < 2 * _LANE:
        return n                                              # single full-array block
    half = _round_up(-(-n // 2), _LANE)                       # guarantees >= 2 steps
    tm = min(_round_up(tile_rows, _LANE), half)
    return max(_LANE, (tm // _LANE) * _LANE)


def generator_xi_forward(z, weights, biases, *, activation="LeakyReLU",
                         negative_slope=0.2, tile_rows=4096):
    """Pallas equivalent of GeneratorXi.forward(z) = |MLP(z.view(-1, input_dim))|.

    z:        any shape flattening to (-1, input_dim); kept in its incoming dtype
              (cast to bf16 inside the kernel right before the MXU).
    weights:  PyTorch-layout nn.Linear weights, each (out_features, in_features).
    biases:   nn.Linear biases, each (out_features,).
    tile_rows: row-tile target; sweep 2048-8192 to amortize per-grid-step overhead.
    """
    num_linear = len(weights)
    assert len(biases) == num_linear and num_linear >= 1
    input_dim = int(weights[0].shape[1])

    z2 = jnp.asarray(z).reshape(-1, input_dim)                # no f32 upcast, no pad
    n = z2.shape[0]

    # Weight/bias operands: tiny, converted once, VMEM-resident across all tiles.
    def _const_spec(shape):
        # Constant block index -> Pallas skips re-DMA between grid steps.
        return pl.BlockSpec(shape, lambda i: (0, 0))

    wb_operands, wb_specs = [], []
    for lyr in range(num_linear):
        w = jnp.asarray(weights[lyr])
        b = jnp.asarray(biases[lyr]).astype(jnp.float32).reshape(-1, 1)   # (out, 1)
        if num_linear > 1 and lyr == num_linear - 1:
            w_k = w.astype(jnp.float32).T                     # (h_last, 1): VPU path
        else:
            w_k = w.astype(jnp.bfloat16)                      # (out, in): MXU operand
        wb_operands += [w_k, b]
        wb_specs += [_const_spec(w_k.shape), _const_spec(b.shape)]

    # Row tiling: no whole-array jnp.pad; a ragged last z tile is handled by Pallas'
    # out-of-bounds masking (garbage rows stay column-isolated and are never stored),
    # and the lane-padded output columns are sliced off below.
    tm = _pick_tile(n, tile_rows)
    grid = pl.cdiv(n, tm)
    n_cols = grid * tm

    in_specs = [pl.BlockSpec((tm, input_dim), lambda i: (i, 0))] + wb_specs
    out_spec = pl.BlockSpec((1, tm), lambda i: (0, i))        # lane-dense stores
    operands = [z2] + wb_operands

    kernel = functools.partial(
        _generator_xi_kernel, num_linear=num_linear,
        activation=activation, negative_slope=negative_slope)

    flops = 2 * n * sum(int(w.shape[0]) * int(w.shape[1]) for w in weights)
    transc = (n * sum(int(w.shape[0]) for w in weights[:-1])
              if activation in ("Tanh", "Sigmoid", "ELU") else 0)
    bytes_accessed = int(z2.size) * z2.dtype.itemsize + n_cols * 4
    bytes_accessed += sum(int(o.size) * o.dtype.itemsize for o in wb_operands)

    out = pl.pallas_call(
        kernel,
        out_shape=jax.ShapeDtypeStruct((1, n_cols), jnp.float32),
        grid_spec=pltpu.PrefetchScalarGridSpec(
            num_scalar_prefetch=0,
            grid=(grid,),
            in_specs=in_specs,
            out_specs=out_spec,
        ),
        compiler_params=pltpu.CompilerParams(
            dimension_semantics=("parallel",),
            # Buffers here are far below every generation's scoped-VMEM default.
            # If hidden_units ever grow to O(1000), set vmem_limit_bytes explicitly
            # and shrink tile_rows first on v7x (64 MiB physical VMEM).
        ),
        cost_estimate=pl.CostEstimate(
            flops=int(flops), transcendentals=int(transc),
            bytes_accessed=int(bytes_accessed)),
    )(*operands)

    return out[0, :n].reshape(n, 1)


if __name__ == "__main__":
    key = jax.random.PRNGKey(0)

    # Shapes consistent with the module: input_dim=32, hidden_units=[64, 32],
    # LeakyReLU(0.2), final Linear -> 1, then abs.  z flattens (2, 4, 32) -> (8, 32).
    input_dim = 32
    hidden_units = [64, 32]
    activation = "LeakyReLU"
    negative_slope = 0.2

    dims = [input_dim] + hidden_units + [1]
    keys = jax.random.split(key, 2 * len(dims))

    weights, biases = [], []
    for li in range(len(dims) - 1):
        w = jax.random.normal(keys[2 * li], (dims[li + 1], dims[li]), jnp.float32) * 0.1
        b = jax.random.normal(keys[2 * li + 1], (dims[li + 1],), jnp.float32) * 0.1
        weights.append(w)
        biases.append(b)

    def reference(zz):
        # Pure-JAX f32 reference (matches PyTorch: y = x @ W.T + b, act between, abs).
        x = zz.reshape(-1, input_dim).astype(jnp.float32)
        for li in range(len(weights)):
            x = x @ weights[li].T + biases[li]
            if li < len(weights) - 1:
                x = jnp.where(x >= 0, x, negative_slope * x)
        return jnp.abs(x)

    # Test 1: small batch (single-tile path), z = (2, 4, 32) -> (8, 32).
    z_small = jax.random.normal(keys[-1], (2, 4, input_dim), jnp.float32)
    out_small = jax.block_until_ready(generator_xi_forward(
        z_small, weights, biases, activation=activation, negative_slope=negative_slope))
    ref_small = reference(z_small)
    assert out_small.shape == (8, 1), out_small.shape
    assert jnp.allclose(out_small, ref_small, atol=5e-2, rtol=5e-2), \
        float(jnp.max(jnp.abs(out_small - ref_small)))

    # Test 2: multi-tile path (4 grid steps, lane-dense stores, VMEM-resident weights).
    z_big = jax.random.normal(keys[-2], (1024, input_dim), jnp.float32)
    out_big = jax.block_until_ready(generator_xi_forward(
        z_big, weights, biases, activation=activation, negative_slope=negative_slope,
        tile_rows=256))
    ref_big = reference(z_big)
    assert out_big.shape == (1024, 1), out_big.shape
    assert jnp.allclose(out_big, ref_big, atol=5e-2, rtol=5e-2), \
        float(jnp.max(jnp.abs(out_big - ref_big)))

    print("KERNEL_OK")
</pallas_src>

<mosaic_0001>
module attributes {stable_mosaic.version = 11 : i64} {
  func.func @_generator_xi_kernel(%arg0: i32, %arg1: memref<8x32xf32, #tpu.memory_space<vmem>>, %arg2: memref<64x32xbf16, #tpu.memory_space<vmem>>, %arg3: memref<64x1xf32, #tpu.memory_space<vmem>>, %arg4: memref<32x64xbf16, #tpu.memory_space<vmem>>, %arg5: memref<32x1xf32, #tpu.memory_space<vmem>>, %arg6: memref<32x1xf32, #tpu.memory_space<vmem>>, %arg7: memref<1x1xf32, #tpu.memory_space<vmem>>, %arg8: memref<1x8xf32, #tpu.memory_space<vmem>>) attributes {dimension_semantics = [#tpu.dimension_semantics<parallel>], iteration_bounds = array<i64: 1>, scalar_prefetch = 0 : i64, scratch_operands = 0 : i64, tpu.core_type = #tpu.core_type<tc>, window_params = [{transform_indices = @transform_0, window_bounds = array<i64: 8, 32>}, {pipeline_mode = #tpu.pipeline_mode<synchronous>, transform_indices = @transform_1, window_bounds = array<i64: 64, 32>}, {pipeline_mode = #tpu.pipeline_mode<synchronous>, transform_indices = @transform_2, window_bounds = array<i64: 64, 1>}, {pipeline_mode = #tpu.pipeline_mode<synchronous>, transform_indices = @transform_3, window_bounds = array<i64: 32, 64>}, {pipeline_mode = #tpu.pipeline_mode<synchronous>, transform_indices = @transform_4, window_bounds = array<i64: 32, 1>}, {pipeline_mode = #tpu.pipeline_mode<synchronous>, transform_indices = @transform_5, window_bounds = array<i64: 32, 1>}, {pipeline_mode = #tpu.pipeline_mode<synchronous>, transform_indices = @transform_6, window_bounds = array<i64: 1, 1>}, {transform_indices = @transform_7, window_bounds = array<i64: 1, 8>}]} {
    %c0 = arith.constant 0 : index
    %c0_0 = arith.constant 0 : index
    %0 = vector.load %arg1[%c0, %c0_0] : memref<8x32xf32, #tpu.memory_space<vmem>>, vector<8x32xf32>
    %1 = arith.truncf %0 : vector<8x32xf32> to vector<8x32xbf16>
    %c0_1 = arith.constant 0 : index
    %c0_2 = arith.constant 0 : index
    %2 = vector.load %arg2[%c0_1, %c0_2] : memref<64x32xbf16, #tpu.memory_space<vmem>>, vector<64x32xbf16>
    %c0_3 = arith.constant 0 : index
    %c0_4 = arith.constant 0 : index
    %3 = vector.load %arg3[%c0_3, %c0_4] : memref<64x1xf32, #tpu.memory_space<vmem>>, vector<64x1xf32>
    %cst = arith.constant dense<0.000000e+00> : vector<64x8xf32>
    %4 = tpu.matmul %2, %1, %cst {dimension_numbers = #tpu.dot_dimension_numbers<[1], [1], [0], [0], [0, 0, 1, 0], [], []>} : vector<64x32xbf16>, vector<8x32xbf16>, vector<64x8xf32> -> vector<64x8xf32>
    %5 = vector.broadcast %3 : vector<64x1xf32> to vector<64x8xf32>
    %6 = arith.addf %4, %5 : vector<64x8xf32>
    %cst_5 = arith.constant 0.000000e+00 : f32
    %7 = vector.broadcast %cst_5 : f32 to vector<64x8xf32>
    %8 = arith.cmpf oge, %6, %7 : vector<64x8xf32>
    %cst_6 = arith.constant 2.000000e-01 : f32
    %9 = vector.broadcast %cst_6 : f32 to vector<64x8xf32>
    %10 = arith.mulf %9, %6 : vector<64x8xf32>
    %11 = arith.select %8, %6, %10 : vector<64x8xi1>, vector<64x8xf32>
    %c0_7 = arith.constant 0 : index
    %c0_8 = arith.constant 0 : index
    %12 = vector.load %arg4[%c0_7, %c0_8] : memref<32x64xbf16, #tpu.memory_space<vmem>>, vector<32x64xbf16>
    %c0_9 = arith.constant 0 : index
    %c0_10 = arith.constant 0 : index
    %13 = vector.load %arg5[%c0_9, %c0_10] : memref<32x1xf32, #tpu.memory_space<vmem>>, vector<32x1xf32>
    %14 = arith.truncf %11 : vector<64x8xf32> to vector<64x8xbf16>
    %cst_11 = arith.constant dense<0.000000e+00> : vector<32x8xf32>
    %15 = tpu.matmul %12, %14, %cst_11 {dimension_numbers = #tpu.dot_dimension_numbers<[1], [0], [0], [1], [0, 0, 1, 1], [], []>} : vector<32x64xbf16>, vector<64x8xbf16>, vector<32x8xf32> -> vector<32x8xf32>
    %16 = vector.broadcast %13 : vector<32x1xf32> to vector<32x8xf32>
    %17 = arith.addf %15, %16 : vector<32x8xf32>
    %cst_12 = arith.constant 0.000000e+00 : f32
    %18 = vector.broadcast %cst_12 : f32 to vector<32x8xf32>
    %19 = arith.cmpf oge, %17, %18 : vector<32x8xf32>
    %cst_13 = arith.constant 2.000000e-01 : f32
    %20 = vector.broadcast %cst_13 : f32 to vector<32x8xf32>
    %21 = arith.mulf %20, %17 : vector<32x8xf32>
    %22 = arith.select %19, %17, %21 : vector<32x8xi1>, vector<32x8xf32>
    %c0_14 = arith.constant 0 : index
    %c0_15 = arith.constant 0 : index
    %23 = vector.load %arg6[%c0_14, %c0_15] : memref<32x1xf32, #tpu.memory_space<vmem>>, vector<32x1xf32>
    %c0_16 = arith.constant 0 : index
    %c0_17 = arith.constant 0 : index
    %24 = vector.load %arg7[%c0_16, %c0_17] : memref<1x1xf32, #tpu.memory_space<vmem>>, vector<1x1xf32>
    %25 = vector.broadcast %23 : vector<32x1xf32> to vector<32x8xf32>
    %26 = arith.mulf %22, %25 : vector<32x8xf32>
    %cst_18 = arith.constant dense<0.000000e+00> : vector<8xf32>
    %27 = vector.multi_reduction <add>, %26, %cst_18 [0] : vector<32x8xf32> to vector<8xf32>
    %28 = vector.shape_cast %27 : vector<8xf32> to vector<1x8xf32>
    %29 = vector.broadcast %24 : vector<1x1xf32> to vector<1x8xf32>
    %30 = arith.addf %28, %29 : vector<1x8xf32>
    %31 = math.absf %30 : vector<1x8xf32>
    %c0_19 = arith.constant 0 : index
    %c0_20 = arith.constant 0 : index
    %32 = vector.load %arg8[%c0_19, %c0_20] : memref<1x8xf32, #tpu.memory_space<vmem>>, vector<1x8xf32>
    tpu.vector_store %arg8[%c0_19, %c0_20], %31 {strides = array<i32>} : memref<1x8xf32, #tpu.memory_space<vmem>>, vector<1x8xf32>,
    return
  }
  func.func @transform_0(%arg0: i32) -> (i32, i32) {
    %c0_i32 = arith.constant 0 : i32
    %c0_i32_0 = arith.constant 0 : i32
    return %arg0, %c0_i32 : i32, i32
  }
  func.func @transform_1(%arg0: i32) -> (i32, i32) {
    %c0_i32 = arith.constant 0 : i32
    %c0_i32_0 = arith.constant 0 : i32
    %c0_i32_1 = arith.constant 0 : i32
    return %c0_i32, %c0_i32_0 : i32, i32
  }
  func.func @transform_2(%arg0: i32) -> (i32, i32) {
    %c0_i32 = arith.constant 0 : i32
    %c0_i32_0 = arith.constant 0 : i32
    %c0_i32_1 = arith.constant 0 : i32
    return %c0_i32, %c0_i32_0 : i32, i32
  }
  func.func @transform_3(%arg0: i32) -> (i32, i32) {
    %c0_i32 = arith.constant 0 : i32
    %c0_i32_0 = arith.constant 0 : i32
    %c0_i32_1 = arith.constant 0 : i32
    return %c0_i32, %c0_i32_0 : i32, i32
  }
  func.func @transform_4(%arg0: i32) -> (i32, i32) {
    %c0_i32 = arith.constant 0 : i32
    %c0_i32_0 = arith.constant 0 : i32
    %c0_i32_1 = arith.constant 0 : i32
    return %c0_i32, %c0_i32_0 : i32, i32
  }
  func.func @transform_5(%arg0: i32) -> (i32, i32) {
    %c0_i32 = arith.constant 0 : i32
    %c0_i32_0 = arith.constant 0 : i32
    %c0_i32_1 = arith.constant 0 : i32
    return %c0_i32, %c0_i32_0 : i32, i32
  }
  func.func @transform_6(%arg0: i32) -> (i32, i32) {
    %c0_i32 = arith.constant 0 : i32
    %c0_i32_0 = arith.constant 0 : i32
    %c0_i32_1 = arith.constant 0 : i32
    return %c0_i32, %c0_i32_0 : i32, i32
  }
  func.func @transform_7(%arg0: i32) -> (i32, i32) {
    %c0_i32 = arith.constant 0 : i32
    %c0_i32_0 = arith.constant 0 : i32
    return %c0_i32, %arg0 : i32, i32
  }
}

</mosaic_0001>

<bundles_post_ra>
// kernel: tpu_custom_call.1
= control target key start
LH: loop header
LB: loop body
LE: loop exit
PB: predicated region body
PF: predicated region fallthrough
CT: control target
= control target key end

     0   :  { %s596_s0 = inlined_call_operand.vmem [shape: f32[8,32], index: 0, kind: input, shape index: {}]   ;;  %s597_s1 = inlined_call_operand.vmem [shape: bf16[64,32], index: 1, kind: input, shape index: {}]   ;;  %s598_s2 = inlined_call_operand.vmem [shape: f32[64,1], index: 2, kind: input, shape index: {}]   ;;  %s599_s3 = inlined_call_operand.vmem [shape: bf16[32,64], index: 3, kind: input, shape index: {}]   ;;  %s600_s4 = inlined_call_operand.vmem [shape: f32[32,1], index: 4, kind: input, shape index: {}]   ;;  %s601_s5 = inlined_call_operand.vmem [shape: f32[32,1], index: 5, kind: input, shape index: {}]   ;;  %s602_s6 = inlined_call_operand.<no memory space> [shape: f32[1,1], index: 6, kind: input, shape index: {}]   ;;  %s603_s7 = inlined_call_operand.hbm [shape: f32[1,8], index: 7, kind: output, shape index: {}]  }
   0x1   :  { %v12_v0 = vstv %s602_s6 }
   0x2   :  { %13 = vst [vmem:[#allocation2] sm:$0x1] %v12_v0 }
   0x3   :  { %v30_v1 = vld [vmem:[%s596_s0] sm:$0xff]  ;;  %vm108_vm0 = vcmask 261120   ;;  %v471_v4 = vmov 0   ;;  %v46_v6 = vld [vmem:[%s598_s2 + $0x30] sm:$0xff]  ;;  %v47_v8 = vld [vmem:[%s598_s2 + $0x38] sm:$0xff] }
   0x4   :  { %v31_v2 = vpack.c.bf16 %v30_v1, %v30_v1  ;;  %v443_v3 = vld [vmem:[%s597_s1] sm:$0xff]   ;;  %441 = vset.pattern.permute.xlu0 %v471_v4  ;;  %442 = vset.pattern.permute.xlu1 %v471_v4  ;;  %v444_v9 = vld [vmem:[%s597_s1 + $0x8] sm:$0xff]   ;;  %v445_v11 = vld [vmem:[%s597_s1 + $0x10] sm:$0xff]  }
   0x5   :  { %418 = vmatprep.mubr.msk.bf16.mxu0 %vm108_vm0, %v443_v3  ;;  %80 = vperm.xlu0 %441, %v46_v6   ;;  %v44_v7 = vld [vmem:[%s598_s2 + $0x20] sm:$0xff]  ;;  %v45_v10 = vld [vmem:[%s598_s2 + $0x28] sm:$0xff]  ;;  %v42_v12 = vld [vmem:[%s598_s2 + $0x10] sm:$0xff] }
   0x6   :  { %438 = vmatprep.subr.msk.bf16.mxu0 %vm108_vm0, %v31_v2  ;;  %v122_v5 = vsel %vm108_vm0, %v31_v2, 0  ;;  %70 = vperm.xlu1 %442, %v44_v7   ;;  %v43_v13 = vld [vmem:[%s598_s2 + $0x18] sm:$0xff] }
   0x7   :  { %417 = vmatpush3.bf16.xpose.msra.mxu0 %v122_v5 }
   0x9   :  { %85 = vperm.xlu0 %441, %v47_v8  }
   0xa   :  { %75 = vperm.xlu1 %442, %v45_v10  }
   0xe   :  { %419 = vmatmul.mubr.msk.bf16.vlgmr.msra.gmra.mxu0 %vm108_vm0, %v444_v9 }
   0xf   :  { %14 = vsyncpa [#allocation4], 0  ;;  %422 = vmatprep.mubr.msk.bf16.mxu0 %vm108_vm0, %v445_v11  ;;  %60 = vperm.xlu0 %441, %v42_v12   ;;  %v40_v14 = vld [vmem:[%s598_s2] sm:$0xff]  ;;  %v446_v15 = vld [vmem:[%s597_s1 + $0x18] sm:$0xff]   ;;  %vm255_vm1 = vcmask 523264   ;;  %vm352_vm14 = vcmask 64512  }
  0x10   :  { %65 = vperm.xlu1 %442, %v43_v13   ;;  %v41_v16 = vld [vmem:[%s598_s2 + $0x8] sm:$0xff]  ;;  %v217_v17 = vld [vmem:[%s600_s4] sm:$0xff]  ;;  %v219_v19 = vld [vmem:[%s600_s4 + $0x10] sm:$0xff]  ;;  %vm377_vm15 = vcmask 57344  }
  0x11   :  { %v218_v18 = vld [vmem:[%s600_s4 + $0x8] sm:$0xff]  ;;  %v220_v20 = vld [vmem:[%s600_s4 + $0x18] sm:$0xff]  ;;  %v323_v21 = vld [vmem:[%s601_s5] sm:$0xff] }
  0x12   :  { %v324_v22 = vld [vmem:[%s601_s5 + $0x8] sm:$0xff]  ;;  %v325_v23 = vld [vmem:[%s601_s5 + $0x10] sm:$0xff]  ;;  %v326_v24 = vld [vmem:[%s601_s5 + $0x18] sm:$0xff] }
  0x13   :  { %50 = vperm.xlu0 %441, %v40_v14   ;;  %v327_v25 = vld [vmem:[#allocation2] sm:$0x1]  ;;  %v448_v7 = vld [vmem:[%s599_s3 + $0x8] sm:$0xff]  }
  0x14   :  { %55 = vperm.xlu1 %442, %v41_v16   ;;  %v447_v26 = vld [vmem:[%s599_s3] sm:$0xff]   ;;  %s472_s3 = smov [#allocation3]  }
  0x15   :  { %434 = vmatprep.mubr.msk.bf16.mxu1 %vm255_vm1, %v447_v26  ;;  %s385_s18 = sshll.u32 %s472_s3, 4  ;;  %s386_s18 = int_to_ptr.vmem [resolvable:$true] %s385_s18 }
  0x16   :  { %423 = vmatmul.mubr.msk.bf16.gmra.mxu0 %vm108_vm0, %v446_v15  ;;  %s449_s19 = scalar_lea.vmem %s386_s18, 16  ;;  %s453_s20 = scalar_lea.vmem %s386_s18, 32 }
  0x17   :  { %227 = vperm.xlu0 %441, %v217_v17   ;;  %p450_p0 = scmp.ne.s32.totalorder %s386_s18, %s449_s19  ;;  %p454_p1 = scmp.lt.s32.totalorder %s386_s18, %s386_s18 }
  0x18   :  { %232 = vperm.xlu1 %442, %v218_v18   ;;  %p455_p2 = scmp.lt.s32.totalorder %s453_s20, %s449_s19 }
  0x1a   :  { %p456_p3 = por %p455_p2, %p454_p1 }
  0x1b   :  { %237 = vperm.xlu0 %441, %v219_v19  }
  0x1c   :  { %242 = vperm.xlu1 %442, %v220_v20   ;;  %p457_p4 = pnand %p456_p3, %p450_p0 }
  0x1f   :  { %330 = vperm.xlu0 %441, %v323_v21  }
  0x20   :  { %335 = vperm.xlu1 %442, %v324_v22  }
  0x23   :  { %340 = vperm.xlu0 %441, %v325_v23  }
  0x24   :  { %345 = vperm.xlu1 %442, %v326_v24  }
  0x27   :  { %368 = vperm.xlu0 %441, %v327_v25  }
  0x80   :  { %v81_v28 = vpop.permute.xlu0 %80 }
  0x81   :  { %v71_v27 = vpop.permute.xlu1 %70 }
  0x84   :  { %v86_v33 = vpop.permute.xlu0 %85 }
  0x85   :  { %v76_v31 = vpop.permute.xlu1 %75 }
  0x8a   :  { %v61_v40 = vpop.permute.xlu0 %60 }
  0x8b   :  { %v66_v36 = vpop.permute.xlu1 %65 }
  0x8e   :  { %v51_v56 = vpop.permute.xlu0 %50 }
  0x8f   :  { %v56_v47 = vpop.permute.xlu1 %55 }
  0x92   :  { %v228_v8 = vpop.permute.xlu0 %227 }
  0x93   :  { %v233_v9 = vpop.permute.xlu1 %232 }
  0x96   :  { %v238_v10 = vpop.permute.xlu0 %237 }
  0x97   :  { %v243_v12 = vpop.permute.xlu1 %242 }
  0x9a   :  { %v331_v17 = vpop.permute.xlu0 %330 }
  0x9b   :  { %v336_v22 = vpop.permute.xlu1 %335 }
  0xce   :  { %v420_v29 = vpop.f32.mrf.mxu0 }
  0xcf   :  { %v167_v45 = vadd.f32 %v420_v29, %v61_v40  ;;  %v341_v29 = vpop.permute.xlu0 %340 }
  0xd0   :  { %v158_v30 = vpop.f32.mrf.mxu0 }
  0xd1   :  { %v199_v58 = vmul.f32 0.2, %v167_v45  ;;  %v159_v59 = vadd.f32 %v158_v30, %v51_v56  ;;  %vm191_vm7 = vcmp.ge.f32.partialorder %v167_v45, 0.0 }
  0xd2   :  { %v421_v32 = vpop.f32.mrf.mxu0 }
  0xd3   :  { %v170_v41 = vadd.f32 %v421_v32, %v66_v36  ;;  %v197_v1 = vmul.f32 0.2, %v159_v59  ;;  %v207_v2 = vsel %vm191_vm7, %v167_v45, %v199_v58  ;;  %vm189_vm9 = vcmp.ge.f32.partialorder %v159_v59, 0.0 }
  0xd4   :  { %v161_v34 = vpop.f32.mrf.mxu0 }
  0xd5   :  { %v200_v51 = vmul.f32 0.2, %v170_v41  ;;  %v162_v52 = vadd.f32 %v161_v34, %v56_v47  ;;  %vm192_vm6 = vcmp.ge.f32.partialorder %v170_v41, 0.0  ;;  %v205_v5 = vsel %vm189_vm9, %v159_v59, %v197_v1  ;;  %v346_v34 = vpop.permute.xlu1 %345 }
  0xd6   :  { %v424_v35 = vpop.f32.mrf.mxu0 }
  0xd7   :  { %v183_v37 = vadd.f32 %v424_v35, %v81_v28  ;;  %v198_v63 = vmul.f32 0.2, %v162_v52  ;;  %v208_v0 = vsel %vm192_vm6, %v170_v41, %v200_v51  ;;  %vm190_vm8 = vcmp.ge.f32.partialorder %v162_v52, 0.0 }
  0xd8   :  { %v174_v38 = vpop.f32.mrf.mxu0  ;;  %v222_v3 = vpack.c.bf16 %v208_v0, %v207_v2 }
  0xd9   :  { %v175_v39 = vadd.f32 %v174_v38, %v71_v27  ;;  %v203_v43 = vmul.f32 0.2, %v183_v37  ;;  %vm195_vm2 = vcmp.ge.f32.partialorder %v183_v37, 0.0  ;;  %v206_v4 = vsel %vm190_vm8, %v162_v52, %v198_v63 }
  0xda   :  { %v425_v42 = vpop.f32.mrf.mxu0  ;;  %v221_v6 = vpack.c.bf16 %v206_v4, %v205_v5 }
  0xdb   :  { %v186_v44 = vadd.f32 %v425_v42, %v86_v33  ;;  %v201_v48 = vmul.f32 0.2, %v175_v39  ;;  %vm193_vm4 = vcmp.ge.f32.partialorder %v175_v39, 0.0  ;;  %v211_v54 = vsel %vm195_vm2, %v183_v37, %v203_v43 }
  0xdc   :  { %v177_v46 = vpop.f32.mrf.mxu0  ;;  %v371_v42 = vlaneseq }
  0xdd   :  { %v204_v49 = vmul.f32 0.2, %v186_v44  ;;  %v178_v50 = vadd.f32 %v177_v46, %v76_v31  ;;  %vm196_vm3 = vcmp.ge.f32.partialorder %v186_v44, 0.0  ;;  %v209_v60 = vsel %vm193_vm4, %v175_v39, %v201_v48 }
  0xde   :  { %v372_v45 = vshrl.u32 %v371_v42, 7 }
  0xdf   :  { %vm194_vm5 = vcmp.ge.f32.partialorder %v178_v50, 0.0  ;;  %v202_v53 = vmul.f32 0.2, %v178_v50  ;;  %v212_v55 = vsel %vm196_vm3, %v186_v44, %v204_v49 }
  0xe0   :  { %v224_v57 = vpack.c.bf16 %v212_v55, %v211_v54  ;;  %v373_v48 = vsub.s32 0, %v372_v45 }
  0xe1   :  { %v210_v61 = vsel %vm194_vm5, %v178_v50, %v202_v53  ;;  %v369_v50 = vpop.permute.xlu0 %368 }
  0xe2   :  { %426 = vmatprep.subr.bf16.mxu1 %v224_v57  ;;  %v223_v62 = vpack.c.bf16 %v210_v61, %v209_v60  ;;  %v374_v52 = vrot.slane %v369_v50, %v373_v48 }
  0xe3   :  { %427 = vmatpush3.bf16.msra.mxu1 %v224_v57 }
  0xe4   :  { %428 = vmatprep.subr.bf16.mxu1 %v223_v62 }
  0xe7   :  { %429 = vmatpush3.bf16.msra.mxu1 %v223_v62 }
  0xe8   :  { %430 = vmatprep.subr.bf16.mxu1 %v222_v3 }
  0xeb   :  { %431 = vmatpush3.bf16.msra.mxu1 %v222_v3 }
  0xec   :  { %432 = vmatprep.subr.bf16.mxu1 %v221_v6 }
  0xef   :  { %433 = vmatpush3.bf16.msra.mxu1 %v221_v6 }
  0xf2   :  { %435 = vmatmul.mubr.msk.bf16.vlgmr.msra.gmra.mxu1 %vm255_vm1, %v448_v7 }
 0x1b2   :  { %v436_v11 = vpop.f32.mrf.mxu1 }
 0x1b3   :  { %v305_v13 = vadd.f32 %v436_v11, %v238_v10 }
 0x1b4   :  { %v296_v14 = vpop.f32.mrf.mxu1 }
 0x1b5   :  { %v297_v15 = vadd.f32 %v296_v14, %v228_v8  ;;  %v317_v18 = vmul.f32 0.2, %v305_v13  ;;  %vm313_vm11 = vcmp.ge.f32.partialorder %v305_v13, 0.0 }
 0x1b6   :  { %v437_v16 = vpop.f32.mrf.mxu1 }
 0x1b7   :  { %vm311_vm10 = vcmp.ge.f32.partialorder %v297_v15, 0.0  ;;  %v315_v19 = vmul.f32 0.2, %v297_v15  ;;  %v308_v20 = vadd.f32 %v437_v16, %v243_v12  ;;  %v321_v26 = vsel %vm313_vm11, %v305_v13, %v317_v18 }
 0x1b8   :  { %v299_v21 = vpop.f32.mrf.mxu1  ;;  %v350_v32 = vmul.f32 %v341_v29, %v321_v26 }
 0x1b9   :  { %v319_v23 = vsel %vm311_vm10, %v297_v15, %v315_v19  ;;  %v318_v24 = vmul.f32 0.2, %v308_v20  ;;  %v300_v25 = vadd.f32 %v299_v21, %v233_v9  ;;  %vm314_vm12 = vcmp.ge.f32.partialorder %v308_v20, 0.0 }
 0x1ba   :  { %v348_v28 = vmul.f32 %v331_v17, %v319_v23  ;;  %v356_v39 = vsel %vm352_vm14, %v350_v32, 0.0 }
 0x1bb   :  { %vm312_vm13 = vcmp.ge.f32.partialorder %v300_v25, 0.0  ;;  %v316_v27 = vmul.f32 0.2, %v300_v25  ;;  %v322_v30 = vsel %vm314_vm12, %v308_v20, %v318_v24 }
 0x1bc   :  { %v353_v35 = vsel %vm352_vm14, %v348_v28, 0.0  ;;  %v351_v36 = vmul.f32 %v346_v34, %v322_v30 }
 0x1bd   :  { %v320_v31 = vsel %vm312_vm13, %v300_v25, %v316_v27 }
 0x1be   :  { %v349_v33 = vmul.f32 %v336_v22, %v320_v31  ;;  %v358_v41 = vsel %vm352_vm14, %v351_v36, 0.0 }
 0x1c0   :  { %v354_v37 = vsel %vm352_vm14, %v349_v33, 0.0 }
 0x1c1   :  { %v355_v38 = vadd.f32 %v354_v37, %v353_v35 }
 0x1c3   :  { %v357_v40 = vadd.f32 %v356_v39, %v355_v38 }
 0x1c5   :  { %v359_v43 = vadd.f32 %v358_v41, %v357_v40 }
 0x1c7   :  { %v360_v44 = vrot.slane %v359_v43, 4 }
 0x1c9   :  { %v361_v46 = vadd.f32 %v360_v44, %v359_v43 }
 0x1cb   :  { %v362_v47 = vrot.slane %v361_v46, 2 }
 0x1cd   :  { %v363_v49 = vadd.f32 %v362_v47, %v361_v46 }
 0x1cf   :  { %v364_v51 = vrot.slane %v363_v49, 1 }
 0x1d1   :  { %v365_v53 = vadd.f32 %v364_v51, %v363_v49 }
 0x1d3   :  { %v375_v54 = vadd.f32 %v374_v52, %v365_v53 }
 0x1d5   :  { %v376_v55 = vand.u32 2147483647, %v375_v54 }
 0x1d7   :  { %378 = vst.msk [vmem:[#allocation3] sm:$0x1] %vm377_vm15, %v376_v55 }
 0x1d8   :  { %460 = shalt.err (!%p457_p4)
}
 0x1d9   :  { %388 = dma.vmem_to_hbm [thread:$0]  %s386_s18, 16, %s603_s7, [#allocation4]  }
 0x1da   :  { %469 = dma.done.wait [#allocation4], 16  }
 0x1db   :  { %470 = vsyncadd [#allocation4], 4294967280 }
 0x1dc   :  { %392 = vsyncpa [#allocation4], 1 }

</bundles_post_ra>
